<compile_context>
chip_gen: v7x
topology: tpu7x:2x2x1
jax: 0.10.0
libtpu: 0.0.40
codegen_flags: <defaults>
</compile_context>

<pallas_src>
import jax
import jax.numpy as jnp
import numpy as np
from jax import lax
from jax.experimental import pallas as pl
from jax.experimental.pallas import tpu as pltpu


def _round_up(n, m):
    return ((n + m - 1) // m) * m


def _cdiv(a, b):
    return -(-a // b)


def _sigmoid(z):
    # Exact sigmoid with a single EUP transcendental (tanh) per element.
    return 0.5 * jnp.tanh(0.5 * z) + 0.5


def mlp_sigmoid_kernel(x_ref, w1_ref, b1_ref, w2_ref, b2_ref, w3_ref, b3_ref, o_ref):
    """Three fused Linear+sigmoid layers on one batch tile, in (features, batch) layout."""
    x = x_ref[...]                                       # (TILE_B, F)
    # h1^T = W1 @ x^T : contract x's feature axis on the MXU (no data transpose).
    z1 = lax.dot_general(
        w1_ref[...], x,
        dimension_numbers=(((1,), (1,)), ((), ())),
        preferred_element_type=jnp.float32,
    ) + b1_ref[...]                                      # (15, TILE_B)
    h1 = _sigmoid(z1)

    z2 = jnp.dot(w2_ref[...], h1, preferred_element_type=jnp.float32) + b2_ref[...]
    h2 = _sigmoid(z2)                                    # (8, TILE_B)

    # MXU slot is far from saturated, so the M=1 matmul is fine here
    # (a VPU multiply + 8-row reduce would also work).
    z3 = jnp.dot(w3_ref[...], h2, preferred_element_type=jnp.float32) + b3_ref[...]
    h3 = _sigmoid(z3)                                    # (1, TILE_B)

    o_ref[...] = h3.astype(o_ref.dtype)


def _choose_tiling(B, target_tile=4096):
    """Pick (num_tiles, tile_b): even grid >= 2 when possible (v7x megacore),
    tile sized proportionally to B (128-aligned) to limit padding waste."""
    num_tiles = max(1, _cdiv(B, target_tile))
    if num_tiles == 1 and B >= 256:
        num_tiles = 2
    elif num_tiles > 1 and num_tiles % 2 == 1:
        num_tiles += 1
    tile_b = _round_up(_cdiv(B, num_tiles), 128)
    return num_tiles, tile_b


def network_forward(x, params, target_tile=4096):
    """Batch-gridded Pallas MLP. Returns (B, 1) predictions."""
    w1, b1, w2, b2, w3, b3 = params
    B, F = x.shape

    num_tiles, tile_b = _choose_tiling(B, target_tile)
    b_pad = num_tiles * tile_b
    if b_pad != B:
        # Padded rows compute sigmoid(bias) garbage and are sliced off below.
        x = jnp.pad(x, ((0, b_pad - B), (0, 0)))

    def resident(a):
        # Full-array block + constant index_map -> stays VMEM-resident across steps.
        return pl.BlockSpec(a.shape, lambda i: (0, 0))

    out = pl.pallas_call(
        mlp_sigmoid_kernel,
        out_shape=jax.ShapeDtypeStruct((1, b_pad), jnp.float32),
        grid=(num_tiles,),
        in_specs=[
            pl.BlockSpec((tile_b, F), lambda i: (i, 0)),  # x: streamed per grid step
            resident(w1), resident(b1),
            resident(w2), resident(b2),
            resident(w3), resident(b3),
        ],
        # Lane-dense output block: (1, tile_b) -> unmasked vector stores.
        out_specs=pl.BlockSpec((1, tile_b), lambda i: (0, i)),
        compiler_params=pltpu.CompilerParams(
            dimension_semantics=("parallel",),  # megacore sharding on v7x
        ),
    )(x, w1, b1, w2, b2, w3, b3)

    return out[0, :B].reshape(B, 1)


def init_params(key, num_input_features):
    """Deterministic init mimicking nn.Linear's uniform(-1/sqrt(fan_in), +1/sqrt(fan_in)).

    Weights are stored PyTorch-style as (out_features, in_features); biases as
    (out_features, 1) so they broadcast along the lane (batch) axis in-kernel.
    """
    dims = [(num_input_features, 15), (15, 8), (8, 1)]
    params = []
    for fan_in, fan_out in dims:
        kw, kb, key = jax.random.split(key, 3)
        bound = 1.0 / np.sqrt(fan_in)
        w = jax.random.uniform(kw, (fan_out, fan_in), jnp.float32, -bound, bound)
        b = jax.random.uniform(kb, (fan_out, 1), jnp.float32, -bound, bound)
        params += [w, b]
    return tuple(params)


def reference_forward(x, params):
    w1, b1, w2, b2, w3, b3 = params
    h = jax.nn.sigmoid(x @ w1.T + b1.T)
    h = jax.nn.sigmoid(h @ w2.T + b2.T)
    return jax.nn.sigmoid(h @ w3.T + b3.T)


if __name__ == "__main__":
    key = jax.random.PRNGKey(0)
    num_input_features = 32

    kx, kp, kx2 = jax.random.split(key, 3)
    params = init_params(kp, num_input_features)

    # Small case (single grid step, matches the original toy size).
    batch = 8
    x = jax.random.normal(kx, (batch, num_input_features), jnp.float32)
    out = jax.block_until_ready(network_forward(x, params))
    ref = reference_forward(x, params)
    np.testing.assert_allclose(np.asarray(out), np.asarray(ref), rtol=1e-5, atol=1e-6)
    assert out.shape == (batch, 1)

    # Larger, non-multiple batch to exercise the batch grid (even split) + padding path.
    batch2 = 2053
    x2 = jax.random.normal(kx2, (batch2, num_input_features), jnp.float32)
    out2 = jax.block_until_ready(network_forward(x2, params))
    ref2 = reference_forward(x2, params)
    np.testing.assert_allclose(np.asarray(out2), np.asarray(ref2), rtol=1e-5, atol=1e-6)
    assert out2.shape == (batch2, 1)

    print("KERNEL_OK")
</pallas_src>

<mosaic_0001>
module attributes {stable_mosaic.version = 11 : i64} {
  func.func @mlp_sigmoid_kernel(%arg0: i32, %arg1: memref<128x32xf32, #tpu.memory_space<vmem>>, %arg2: memref<15x32xf32, #tpu.memory_space<vmem>>, %arg3: memref<15x1xf32, #tpu.memory_space<vmem>>, %arg4: memref<8x15xf32, #tpu.memory_space<vmem>>, %arg5: memref<8x1xf32, #tpu.memory_space<vmem>>, %arg6: memref<1x8xf32, #tpu.memory_space<vmem>>, %arg7: memref<1x1xf32, #tpu.memory_space<vmem>>, %arg8: memref<1x128xf32, #tpu.memory_space<vmem>>) attributes {dimension_semantics = [#tpu.dimension_semantics<parallel>], iteration_bounds = array<i64: 1>, scalar_prefetch = 0 : i64, scratch_operands = 0 : i64, tpu.core_type = #tpu.core_type<tc>, window_params = [{transform_indices = @transform_0, window_bounds = array<i64: 128, 32>}, {pipeline_mode = #tpu.pipeline_mode<synchronous>, transform_indices = @transform_1, window_bounds = array<i64: 15, 32>}, {pipeline_mode = #tpu.pipeline_mode<synchronous>, transform_indices = @transform_2, window_bounds = array<i64: 15, 1>}, {pipeline_mode = #tpu.pipeline_mode<synchronous>, transform_indices = @transform_3, window_bounds = array<i64: 8, 15>}, {pipeline_mode = #tpu.pipeline_mode<synchronous>, transform_indices = @transform_4, window_bounds = array<i64: 8, 1>}, {pipeline_mode = #tpu.pipeline_mode<synchronous>, transform_indices = @transform_5, window_bounds = array<i64: 1, 8>}, {pipeline_mode = #tpu.pipeline_mode<synchronous>, transform_indices = @transform_6, window_bounds = array<i64: 1, 1>}, {transform_indices = @transform_7, window_bounds = array<i64: 1, 128>}]} {
    %c0 = arith.constant 0 : index
    %c0_0 = arith.constant 0 : index
    %0 = vector.load %arg1[%c0, %c0_0] : memref<128x32xf32, #tpu.memory_space<vmem>>, vector<128x32xf32>
    %c0_1 = arith.constant 0 : index
    %c0_2 = arith.constant 0 : index
    %1 = vector.load %arg2[%c0_1, %c0_2] : memref<15x32xf32, #tpu.memory_space<vmem>>, vector<15x32xf32>
    %cst = arith.constant dense<0.000000e+00> : vector<15x128xf32>
    %2 = tpu.matmul %1, %0, %cst {dimension_numbers = #tpu.dot_dimension_numbers<[1], [1], [0], [0], [0, 0, 1, 0], [], []>} : vector<15x32xf32>, vector<128x32xf32>, vector<15x128xf32> -> vector<15x128xf32>
    %c0_3 = arith.constant 0 : index
    %c0_4 = arith.constant 0 : index
    %3 = vector.load %arg3[%c0_3, %c0_4] : memref<15x1xf32, #tpu.memory_space<vmem>>, vector<15x1xf32>
    %4 = vector.broadcast %3 : vector<15x1xf32> to vector<15x128xf32>
    %5 = arith.addf %2, %4 : vector<15x128xf32>
    %cst_5 = arith.constant 5.000000e-01 : f32
    %6 = vector.broadcast %cst_5 : f32 to vector<15x128xf32>
    %7 = arith.mulf %6, %5 : vector<15x128xf32>
    %8 = math.tanh %7 : vector<15x128xf32>
    %cst_6 = arith.constant 5.000000e-01 : f32
    %9 = vector.broadcast %cst_6 : f32 to vector<15x128xf32>
    %10 = arith.mulf %9, %8 : vector<15x128xf32>
    %cst_7 = arith.constant 5.000000e-01 : f32
    %11 = vector.broadcast %cst_7 : f32 to vector<15x128xf32>
    %12 = arith.addf %10, %11 : vector<15x128xf32>
    %c0_8 = arith.constant 0 : index
    %c0_9 = arith.constant 0 : index
    %13 = vector.load %arg4[%c0_8, %c0_9] : memref<8x15xf32, #tpu.memory_space<vmem>>, vector<8x15xf32>
    %cst_10 = arith.constant dense<0.000000e+00> : vector<8x128xf32>
    %14 = tpu.matmul %13, %12, %cst_10 {dimension_numbers = #tpu.dot_dimension_numbers<[1], [0], [0], [1], [0, 0, 1, 1], [], []>} : vector<8x15xf32>, vector<15x128xf32>, vector<8x128xf32> -> vector<8x128xf32>
    %c0_11 = arith.constant 0 : index
    %c0_12 = arith.constant 0 : index
    %15 = vector.load %arg5[%c0_11, %c0_12] : memref<8x1xf32, #tpu.memory_space<vmem>>, vector<8x1xf32>
    %16 = vector.broadcast %15 : vector<8x1xf32> to vector<8x128xf32>
    %17 = arith.addf %14, %16 : vector<8x128xf32>
    %cst_13 = arith.constant 5.000000e-01 : f32
    %18 = vector.broadcast %cst_13 : f32 to vector<8x128xf32>
    %19 = arith.mulf %18, %17 : vector<8x128xf32>
    %20 = math.tanh %19 : vector<8x128xf32>
    %cst_14 = arith.constant 5.000000e-01 : f32
    %21 = vector.broadcast %cst_14 : f32 to vector<8x128xf32>
    %22 = arith.mulf %21, %20 : vector<8x128xf32>
    %cst_15 = arith.constant 5.000000e-01 : f32
    %23 = vector.broadcast %cst_15 : f32 to vector<8x128xf32>
    %24 = arith.addf %22, %23 : vector<8x128xf32>
    %c0_16 = arith.constant 0 : index
    %c0_17 = arith.constant 0 : index
    %25 = vector.load %arg6[%c0_16, %c0_17] : memref<1x8xf32, #tpu.memory_space<vmem>>, vector<1x8xf32>
    %cst_18 = arith.constant dense<0.000000e+00> : vector<1x128xf32>
    %26 = tpu.matmul %25, %24, %cst_18 {dimension_numbers = #tpu.dot_dimension_numbers<[1], [0], [0], [1], [0, 0, 1, 1], [], []>} : vector<1x8xf32>, vector<8x128xf32>, vector<1x128xf32> -> vector<1x128xf32>
    %c0_19 = arith.constant 0 : index
    %c0_20 = arith.constant 0 : index
    %27 = vector.load %arg7[%c0_19, %c0_20] : memref<1x1xf32, #tpu.memory_space<vmem>>, vector<1x1xf32>
    %28 = vector.broadcast %27 : vector<1x1xf32> to vector<1x128xf32>
    %29 = arith.addf %26, %28 : vector<1x128xf32>
    %cst_21 = arith.constant 5.000000e-01 : f32
    %30 = vector.broadcast %cst_21 : f32 to vector<1x128xf32>
    %31 = arith.mulf %30, %29 : vector<1x128xf32>
    %32 = math.tanh %31 : vector<1x128xf32>
    %cst_22 = arith.constant 5.000000e-01 : f32
    %33 = vector.broadcast %cst_22 : f32 to vector<1x128xf32>
    %34 = arith.mulf %33, %32 : vector<1x128xf32>
    %cst_23 = arith.constant 5.000000e-01 : f32
    %35 = vector.broadcast %cst_23 : f32 to vector<1x128xf32>
    %36 = arith.addf %34, %35 : vector<1x128xf32>
    %c0_24 = arith.constant 0 : index
    %c0_25 = arith.constant 0 : index
    %37 = vector.load %arg8[%c0_24, %c0_25] : memref<1x128xf32, #tpu.memory_space<vmem>>, vector<1x128xf32>
    tpu.vector_store %arg8[%c0_24, %c0_25], %36 {strides = array<i32>} : memref<1x128xf32, #tpu.memory_space<vmem>>, vector<1x128xf32>,
    return
  }
  func.func @transform_0(%arg0: i32) -> (i32, i32) {
    %c0_i32 = arith.constant 0 : i32
    %c0_i32_0 = arith.constant 0 : i32
    return %arg0, %c0_i32 : i32, i32
  }
  func.func @transform_1(%arg0: i32) -> (i32, i32) {
    %c0_i32 = arith.constant 0 : i32
    %c0_i32_0 = arith.constant 0 : i32
    %c0_i32_1 = arith.constant 0 : i32
    return %c0_i32, %c0_i32_0 : i32, i32
  }
  func.func @transform_2(%arg0: i32) -> (i32, i32) {
    %c0_i32 = arith.constant 0 : i32
    %c0_i32_0 = arith.constant 0 : i32
    %c0_i32_1 = arith.constant 0 : i32
    return %c0_i32, %c0_i32_0 : i32, i32
  }
  func.func @transform_3(%arg0: i32) -> (i32, i32) {
    %c0_i32 = arith.constant 0 : i32
    %c0_i32_0 = arith.constant 0 : i32
    %c0_i32_1 = arith.constant 0 : i32
    return %c0_i32, %c0_i32_0 : i32, i32
  }
  func.func @transform_4(%arg0: i32) -> (i32, i32) {
    %c0_i32 = arith.constant 0 : i32
    %c0_i32_0 = arith.constant 0 : i32
    %c0_i32_1 = arith.constant 0 : i32
    return %c0_i32, %c0_i32_0 : i32, i32
  }
  func.func @transform_5(%arg0: i32) -> (i32, i32) {
    %c0_i32 = arith.constant 0 : i32
    %c0_i32_0 = arith.constant 0 : i32
    %c0_i32_1 = arith.constant 0 : i32
    return %c0_i32, %c0_i32_0 : i32, i32
  }
  func.func @transform_6(%arg0: i32) -> (i32, i32) {
    %c0_i32 = arith.constant 0 : i32
    %c0_i32_0 = arith.constant 0 : i32
    %c0_i32_1 = arith.constant 0 : i32
    return %c0_i32, %c0_i32_0 : i32, i32
  }
  func.func @transform_7(%arg0: i32) -> (i32, i32) {
    %c0_i32 = arith.constant 0 : i32
    %c0_i32_0 = arith.constant 0 : i32
    return %c0_i32, %arg0 : i32, i32
  }
}

</mosaic_0001>

<bundles_post_ra>
// kernel: tpu_custom_call.1
= control target key start
LH: loop header
LB: loop body
LE: loop exit
PB: predicated region body
PF: predicated region fallthrough
CT: control target
= control target key end

     0   :  { %s745_s0 = inlined_call_operand.vmem [shape: f32[128,32], index: 0, kind: input, shape index: {}]   ;;  %s746_s1 = inlined_call_operand.vmem [shape: f32[15,32], index: 1, kind: input, shape index: {}]   ;;  %s747_s2 = inlined_call_operand.vmem [shape: f32[15,1], index: 2, kind: input, shape index: {}]   ;;  %s748_s3 = inlined_call_operand.vmem [shape: f32[8,15], index: 3, kind: input, shape index: {}]   ;;  %s749_s4 = inlined_call_operand.vmem [shape: f32[8,1], index: 4, kind: input, shape index: {}]   ;;  %s750_s5 = inlined_call_operand.vmem [shape: f32[1,8], index: 5, kind: input, shape index: {}]   ;;  %s751_s6 = inlined_call_operand.<no memory space> [shape: f32[1,1], index: 6, kind: input, shape index: {}]   ;;  %s752_s7 = inlined_call_operand.hbm [shape: f32[1,128], index: 7, kind: output, shape index: {}]  }
   0x1   :  { %v12_v0 = vstv %s751_s6 }
   0x2   :  { %13 = vst [vmem:[#allocation2] sm:$0x1] %v12_v0 }
   0x3   :  { %v29_v1 = vld [vmem:[%s745_s0] sm:$0xff]  ;;  %v30_v2 = vld [vmem:[%s745_s0 + $0x8] sm:$0xff]  ;;  %vm59_vm0 = vcmask 261120   ;;  %v31_v3 = vld [vmem:[%s745_s0 + $0x10] sm:$0xff]  ;;  %v573_v7 = vmov 0  }
   0x4   :  { %v481_v4 = vpack.c.bf16 %v30_v2, %v29_v1  ;;  %vm633_vm1 = vmpackc.low %vm59_vm0, %vm59_vm0  ;;  %v32_v6 = vld [vmem:[%s745_s0 + $0x18] sm:$0xff]  ;;  %539 = vset.pattern.permute.xlu0 %v573_v7  ;;  %540 = vset.pattern.permute.xlu1 %v573_v7  ;;  %v45_v9 = vld [vmem:[%s746_s1] sm:$0xff] }
   0x5   :  { %v487_v8 = vpack.c.bf16 %v32_v6, %v31_v3  ;;  %v33_v10 = vld [vmem:[%s745_s0 + $0x20] sm:$0xff]  ;;  %v34_v11 = vld [vmem:[%s745_s0 + $0x28] sm:$0xff]  ;;  %466 = vmatprep.mubr.msk.f32.mxu0 %vm59_vm0, %v45_v9 }
   0x6   :  { %483 = vmatprep.subr.msk.bf16.mxu0 %vm633_vm1, %v481_v4  ;;  %v47_v12 = vld [vmem:[%s747_s2] sm:$0xff] }
   0x7   :  { %486 = vmatpush3.bf16.xpose.msk.msra.mxu0 %vm633_vm1, %v481_v4  ;;  %51 = vperm.xlu0 %539, %v47_v12  }
   0x8   :  { %489 = vmatprep.subr.msk.bf16.mxu0 %vm633_vm1, %v487_v8 }
   0x9   :  { %14 = vsyncpa [#allocation4], 0  ;;  %v48_v13 = vld [vmem:[%s747_s2 + $0x8] sm:$0x7f]  ;;  %v493_v14 = vpack.c.bf16 %v34_v11, %v33_v10  ;;  %v35_v15 = vld [vmem:[%s745_s0 + $0x30] sm:$0xff]  ;;  %v574_v31 = vmov 0.0|0.0   ;;  %v293_v60 = vlaneseq }
   0xa   :  { %v36_v16 = vld [vmem:[%s745_s0 + $0x38] sm:$0xff]  ;;  %v37_v18 = vld [vmem:[%s745_s0 + $0x40] sm:$0xff]  ;;  %v38_v19 = vld [vmem:[%s745_s0 + $0x48] sm:$0xff]  ;;  %529 = vmatprep.subr.bf16.mxu1 %v574_v31  ;;  %vm575_vm2 = vmmov 0   ;;  %v576_v32 = vmov 0.0   ;;  %vm208_vm3 = vcmask 1046528  }
   0xb   :  { %56 = vperm.xlu0 %539, %v48_v13   ;;  %v499_v17 = vpack.c.bf16 %v36_v16, %v35_v15  ;;  %v505_v20 = vpack.c.bf16 %v38_v19, %v37_v18  ;;  %v39_v21 = vld [vmem:[%s745_s0 + $0x50] sm:$0xff]  ;;  %v40_v22 = vld [vmem:[%s745_s0 + $0x58] sm:$0xff]  ;;  %v41_v24 = vld [vmem:[%s745_s0 + $0x60] sm:$0xff]  ;;  %473 = vmatprep.mubr.msk.f32.mxu1 %vm575_vm2, %v576_v32  ;;  %vm577_vm4 = vmmov 1   ;;  %vm204_vm6 = vcmask 121856  }
   0xc   :  { %v511_v23 = vpack.c.bf16 %v40_v22, %v39_v21  ;;  %v42_v25 = vld [vmem:[%s745_s0 + $0x68] sm:$0xff]  ;;  %v43_v27 = vld [vmem:[%s745_s0 + $0x70] sm:$0xff]  ;;  %v44_v28 = vld [vmem:[%s745_s0 + $0x78] sm:$0xff]  ;;  %vm297_vm7 = vcmask 64512   ;;  %v294_v61 = vshrl.u32 %v293_v60, 7 }
   0xd   :  { %v517_v26 = vpack.c.bf16 %v42_v25, %v41_v24  ;;  %v523_v29 = vpack.c.bf16 %v44_v28, %v43_v27  ;;  %v46_v30 = vld [vmem:[%s746_s1 + $0x8] sm:$0x7f]  ;;  %v198_v33 = vld [vmem:[%s749_s4] sm:$0xff]  ;;  %vm531_vm5 = vmpackc.low %vm208_vm3, %vm577_vm4 }
   0xe   :  { %201 = vperm.xlu1 %540, %v198_v33   ;;  %v287_v34 = vld [vmem:[#allocation2] sm:$0x1]  ;;  %v295_v62 = vsub.s32 0, %v294_v61 }
   0xf   :  { %492 = vmatpush3.bf16.xpose.msk.msra.mxu0 %vm633_vm1, %v487_v8  ;;  %v197_v50 = vld [vmem:[%s748_s3] sm:$0xff]  ;;  %s578_s3 = smov [#allocation3]  }
  0x10   :  { %495 = vmatprep.subr.msk.bf16.mxu0 %vm633_vm1, %v493_v14  ;;  %v286_v59 = vld [vmem:[%s750_s5] sm:$0x1]  ;;  %s382_s20 = sshll.u32 %s578_s3, 4  ;;  %s383_s20 = int_to_ptr.vmem [resolvable:$true] %s382_s20 }
  0x11   :  { %s549_s5 = scalar_lea.vmem %s383_s20, 16  ;;  %s553_s21 = scalar_lea.vmem %s383_s20, 32 }
  0x12   :  { %290 = vperm.xlu1 %540, %v287_v34   ;;  %p550_p0 = scmp.ne.s32.totalorder %s383_s20, %s549_s5  ;;  %p554_p1 = scmp.lt.s32.totalorder %s383_s20, %s383_s20 }
  0x13   :  { %p555_p2 = scmp.lt.s32.totalorder %s553_s21, %s549_s5 }
  0x15   :  { %p556_p3 = por %p555_p2, %p554_p1 }
  0x17   :  { %498 = vmatpush3.bf16.xpose.msk.msra.mxu0 %vm633_vm1, %v493_v14  ;;  %p557_p4 = pnand %p556_p3, %p550_p0 }
  0x18   :  { %501 = vmatprep.subr.msk.bf16.mxu0 %vm633_vm1, %v499_v17 }
  0x1f   :  { %504 = vmatpush3.bf16.xpose.msk.msra.mxu0 %vm633_vm1, %v499_v17 }
  0x20   :  { %507 = vmatprep.subr.msk.bf16.mxu0 %vm633_vm1, %v505_v20 }
  0x27   :  { %510 = vmatpush3.bf16.xpose.msk.msra.mxu0 %vm633_vm1, %v505_v20 }
  0x28   :  { %513 = vmatprep.subr.msk.bf16.mxu0 %vm633_vm1, %v511_v23 }
  0x2f   :  { %516 = vmatpush3.bf16.xpose.msk.msra.mxu0 %vm633_vm1, %v511_v23 }
  0x30   :  { %519 = vmatprep.subr.msk.bf16.mxu0 %vm633_vm1, %v517_v26 }
  0x37   :  { %522 = vmatpush3.bf16.xpose.msk.msra.mxu0 %vm633_vm1, %v517_v26 }
  0x38   :  { %525 = vmatprep.subr.msk.bf16.mxu0 %vm633_vm1, %v523_v29 }
  0x3f   :  { %528 = vmatpush3.bf16.xpose.msk.msra.mxu0 %vm633_vm1, %v523_v29 }
  0x46   :  { %467 = vmatmul.mubr.msk.f32.vlgmr.msra.gmra.mrb[0].mxu0 %vm59_vm0, %v46_v30 }
  0x86   :  { %v52_v35 = vpop.permute.xlu0 %51 }
  0x8a   :  { %v57_v36 = vpop.permute.xlu0 %56 }
  0x8d   :  { %v202_v51 = vpop.permute.xlu1 %201 }
  0x91   :  { %v291_v63 = vpop.permute.xlu1 %290 }
  0x92   :  { %v296_v0 = vrot.slane %v291_v63, %v295_v62 }
 0x119   :  { %v468_v37 = vpop.f32.mrb[0].mxu0 }
 0x11a   :  { %v186_v38 = vadd.f32 %v468_v37, %v57_v36  ;;  %v180_v39 = vpop.f32.mrb[1].mxu0 }
 0x11b   :  { %v181_v40 = vadd.f32 %v180_v39, %v52_v35 }
 0x11c   :  { %v190_v41 = vmul.f32 0.5, %v186_v38 }
 0x11d   :  { %v189_v42 = vmul.f32 0.5, %v181_v40 }
 0x11e   :  { %541 = vtanh.f32 %v190_v41 }
 0x11f   :  { %543 = vtanh.f32 %v189_v42 }
 0x128   :  { %v542_v43 = vpop.eup %541 }
 0x129   :  { %v544_v44 = vpop.eup %543  ;;  %v194_v45 = vmul.f32 0.5, %v542_v43 }
 0x12a   :  { %v193_v46 = vmul.f32 0.5, %v544_v44 }
 0x12b   :  { %v196_v47 = vadd.f32 0.5, %v194_v45 }
 0x12c   :  { %v195_v48 = vadd.f32 0.5, %v193_v46 }
 0x12e   :  { %v530_v49 = vpack.c.bf16 %v196_v47, %v195_v48 }
 0x130   :  { %532 = vmatpush3.bf16.msk.msra.mxu1 %vm531_vm5, %v530_v49 }
 0x131   :  { %476 = vmatprep.subr.mxu1 %v576_v32 }
 0x133   :  { %474 = vmatmul.mubr.msk.f32.vlgmr.msra.gmra.mrb[0].mxu1 %vm204_vm6, %v197_v50 }
 0x134   :  { %478 = vmatprep.mubr.msk.f32.mxu1 %vm575_vm2, %v576_v32 }
 0x206   :  { %v278_v52 = vpop.f32.mrb[0].mxu1 }
 0x207   :  { %v279_v53 = vadd.f32 %v278_v52, %v202_v51  ;;  %v475_v54 = vpop.f32.mrb[1].mxu1 }
 0x209   :  { %v282_v55 = vmul.f32 0.5, %v279_v53 }
 0x20b   :  { %545 = vtanh.f32 %v282_v55 }
 0x215   :  { %v546_v56 = vpop.eup %545 }
 0x216   :  { %v284_v57 = vmul.f32 0.5, %v546_v56 }
 0x218   :  { %v285_v58 = vadd.f32 0.5, %v284_v57 }
 0x21a   :  { %477 = vmatpush3.msra.mxu1 %v285_v58 }
 0x21b   :  { %479 = vmatmul.mubr.msk.f32.vlgmr.msra.gmra.mrb[2].mxu1 %vm297_vm7, %v286_v59 }
 0x2ee   :  { %v367_v1 = vpop.f32.mrb[2].mxu1 }
 0x2ef   :  { %v368_v2 = vadd.f32 %v367_v1, %v296_v0  ;;  %v480_v3 = vpop.f32.mrb[3].mxu1 }
 0x2f1   :  { %v371_v4 = vmul.f32 0.5, %v368_v2 }
 0x2f3   :  { %547 = vtanh.f32 %v371_v4 }
 0x2fd   :  { %v548_v5 = vpop.eup %547 }
 0x2fe   :  { %v373_v6 = vmul.f32 0.5, %v548_v5 }
 0x300   :  { %v374_v7 = vadd.f32 0.5, %v373_v6 }
 0x302   :  { %375 = vst [vmem:[#allocation3] sm:$0x1] %v374_v7 }
 0x303   :  { %560 = shalt.err (!%p557_p4)
}
 0x304   :  { %s561_s2 = scalar_lea.hbm %s752_s7, 16 }
 0x305   :  { %p562_p5 = scmp.ne.s32.totalorder %s752_s7, %s561_s2  ;;  %p565_p6 = scmp.lt.u32.totalorder %s561_s2, %s752_s7 }
 0x307   :  { %p567_p7 = pnand %p565_p6, %p562_p5 }
 0x309   :  { %570 = shalt.err (!%p567_p7)
}
 0x30a   :  { %385 = dma.vmem_to_hbm [thread:$0]  %s383_s20, 16, %s752_s7, [#allocation4]  }
 0x30b   :  { %571 = dma.done.wait [#allocation4], 16  }
 0x30c   :  { %572 = vsyncadd [#allocation4], 4294967280 }
 0x30d   :  { %389 = vsyncpa [#allocation4], 1 }

</bundles_post_ra>
